<compile_context>
chip_gen: v7x
topology: tpu7x:2x2x1
jax: 0.10.0
libtpu: 0.0.40
codegen_flags: <defaults>
</compile_context>

<pallas_src>
import functools

import jax
import jax.numpy as jnp
import numpy as np
from jax import lax
from jax.experimental import pallas as pl
from jax.experimental.pallas import tpu as pltpu


# --------------------------------------------------------------------------
# Helpers
# --------------------------------------------------------------------------
def _round_up(n, m):
    return ((n + m - 1) // m) * m


_VMEM_LIMIT_CACHE = None


def _vmem_limit():
    """80% of physical VMEM (leaves headroom for compiler scratch), <=110MiB."""
    global _VMEM_LIMIT_CACHE
    if _VMEM_LIMIT_CACHE is None:
        cap = 64 << 20
        try:
            info = pltpu.get_tpu_info()
            cap = int(getattr(info, "vmem_capacity_bytes", cap))
        except Exception:
            pass
        _VMEM_LIMIT_CACHE = min(int(cap * 0.8), 110 << 20)
    return _VMEM_LIMIT_CACHE


# --------------------------------------------------------------------------
# Recurrent GRU kernel with fused input projection.
# Grid: (batch_block, time_chunk).  One grid step == Tc timesteps.
#
# PyTorch GRU cell (gate order r, z, n), with b_hh's r/z parts folded into
# the x-side bias at prep time:
#   gx = x @ W_i(Din,3H) + (b_ih + [b_hh_r | b_hh_z | 0])     (chunk matmul)
#   gh = h @ W_h(H,3H)
#   r  = sigmoid(gx_r + gh_r)
#   z  = sigmoid(gx_z + gh_z)
#   n  = tanh  (gx_n + r * (gh_n + b_hh_n))
#   h' = n + z * (h - n)
# --------------------------------------------------------------------------
def _gru_layer_kernel(x_ref, wi_ref, bi_ref, wh_ref, bhn_ref, h0_ref,
                      out_ref, hlast_ref, h_sc, *, seq_len, mask_tail):
    c = pl.program_id(1)

    @pl.when(c == 0)
    def _init():
        h_sc[...] = h0_ref[...].astype(h_sc.dtype)

    tc, bb, din = x_ref.shape
    hdim = h_sc.shape[-1]

    wi = wi_ref[...]            # (Din, 3H) bf16, VMEM resident
    wh = wh_ref[...]            # (H,   3H) bf16, VMEM resident
    bi = bi_ref[...]            # (1,   3H) f32
    bhn = bhn_ref[...]          # (1,    H) f32

    # Hoisted per-chunk input projection: one (Tc*B, Din) @ (Din, 3H) matmul.
    gx = jnp.dot(x_ref[...].reshape(tc * bb, din).astype(jnp.bfloat16), wi,
                 preferred_element_type=jnp.float32) + bi
    gx = gx.reshape(tc, bb, 3 * hdim)

    h = h_sc[...]
    for i in range(tc):                       # static unroll over the chunk
        g = gx[i]
        gh = jnp.dot(h.astype(jnp.bfloat16), wh,
                     preferred_element_type=jnp.float32)
        r = jax.nn.sigmoid(g[:, :hdim] + gh[:, :hdim])
        z = jax.nn.sigmoid(g[:, hdim:2 * hdim] + gh[:, hdim:2 * hdim])
        n = jnp.tanh(g[:, 2 * hdim:] + r * (gh[:, 2 * hdim:] + bhn))
        h_new = n + z * (h - n)
        out_ref[i] = h_new.astype(out_ref.dtype)
        if mask_tail:
            # Padded timesteps (t >= seq_len) must not advance the carry.
            h = jnp.where(c * tc + i < seq_len, h_new, h)
        else:
            h = h_new

    h_sc[...] = h

    @pl.when(c == pl.num_programs(1) - 1)
    def _fin():
        hlast_ref[...] = h.astype(hlast_ref.dtype)


def gru_layer_pallas(x_seq, wi_t, bi, wh_t, bhn, h0, *, time_chunk=16,
                     out_dtype=jnp.bfloat16):
    """Run one GRU layer over the whole sequence (Tc timesteps per grid step)."""
    S, B, Din = x_seq.shape
    H = h0.shape[-1]
    H3 = wi_t.shape[-1]

    tc = max(1, min(int(time_chunk), S))
    Sp = _round_up(S, tc)
    if Sp != S:
        x_seq = jnp.pad(x_seq, ((0, Sp - S), (0, 0), (0, 0)))

    # Split the batch across TensorCores (v7x megacore) when each half is
    # still sublane-aligned; otherwise keep a single batch block.
    nb = 2 if (B % 2 == 0 and (B // 2) % 8 == 0) else 1
    Bb = B // nb

    kernel = functools.partial(_gru_layer_kernel, seq_len=S,
                               mask_tail=(Sp != S))

    out, h_last = pl.pallas_call(
        kernel,
        out_shape=(jax.ShapeDtypeStruct((Sp, B, H), out_dtype),
                   jax.ShapeDtypeStruct((B, H), jnp.float32)),
        grid_spec=pltpu.PrefetchScalarGridSpec(
            num_scalar_prefetch=0,
            grid=(nb, Sp // tc),
            in_specs=[pl.BlockSpec((tc, Bb, Din), lambda b, c: (c, b, 0)),
                      pl.BlockSpec((Din, H3), lambda b, c: (0, 0)),
                      pl.BlockSpec((1, H3), lambda b, c: (0, 0)),
                      pl.BlockSpec((H, H3), lambda b, c: (0, 0)),
                      pl.BlockSpec((1, H), lambda b, c: (0, 0)),
                      pl.BlockSpec((Bb, H), lambda b, c: (b, 0))],
            out_specs=[pl.BlockSpec((tc, Bb, H), lambda b, c: (c, b, 0)),
                       pl.BlockSpec((Bb, H), lambda b, c: (b, 0))],
            scratch_shapes=[pltpu.VMEM((Bb, H), jnp.float32)]),
        compiler_params=pltpu.CompilerParams(
            dimension_semantics=("parallel", "arbitrary"),
            vmem_limit_bytes=_vmem_limit()),
    )(x_seq, wi_t, bi, wh_t, bhn, h0)
    return out[:S], h_last


# --------------------------------------------------------------------------
# Fused Linear + LogSoftmax.
# Grid: (row_tile, pass, vocab_tile).  Pass 0: online logsumexp over the
# vocab (running max / sum-exp in VMEM scratch).  Pass 1: recompute the
# tile's logits (x tile is VMEM-resident, the bf16 weight simply streams a
# second time) and write logits - lse directly.  The output index map keeps
# the block index constant during pass 0, so no garbage is written to HBM.
# --------------------------------------------------------------------------
def _fc_logsoftmax_kernel(x_ref, w_ref, b_ref, o_ref, m_sc, l_sc):
    p = pl.program_id(1)
    j = pl.program_id(2)

    @pl.when((p == 0) & (j == 0))
    def _init():
        m_sc[...] = jnp.full_like(m_sc, -jnp.inf)
        l_sc[...] = jnp.zeros_like(l_sc)

    logits = jnp.dot(x_ref[...].astype(jnp.bfloat16), w_ref[...],
                     preferred_element_type=jnp.float32) + b_ref[...]

    @pl.when(p == 0)
    def _lse_update():
        m_prev = m_sc[...]
        m_new = jnp.maximum(m_prev, jnp.max(logits, axis=-1, keepdims=True))
        l_sc[...] = (l_sc[...] * jnp.exp(m_prev - m_new)
                     + jnp.sum(jnp.exp(logits - m_new), axis=-1, keepdims=True))
        m_sc[...] = m_new

    @pl.when(p == 1)
    def _normalize():
        lse = m_sc[...] + jnp.log(l_sc[...])
        o_ref[...] = (logits - lse).astype(o_ref.dtype)


def fc_logsoftmax_pallas(x2d, w_bf16, b_f32, *, row_tile=256, vocab_tile=512):
    R, H = x2d.shape
    V = w_bf16.shape[-1]

    row_tile = _round_up(max(8, int(row_tile)), 8)
    vocab_tile = _round_up(max(128, int(vocab_tile)), 128)

    tm = _round_up(R, 8) if R <= row_tile else row_tile
    Rp = _round_up(R, tm)
    tv = _round_up(V, 128) if V <= vocab_tile else vocab_tile
    Vp = _round_up(V, tv)

    if Rp != R:
        x2d = jnp.pad(x2d, ((0, Rp - R), (0, 0)))
    if Vp != V:
        w_bf16 = jnp.pad(w_bf16, ((0, 0), (0, Vp - V)))
        # Padded vocab columns get a hugely negative bias so exp() ~ 0 and
        # they never win the running max -> the logsumexp is unaffected.
        b_f32 = jnp.pad(b_f32, ((0, 0), (0, Vp - V)), constant_values=-1e30)

    grid = (Rp // tm, 2, Vp // tv)

    logp = pl.pallas_call(
        _fc_logsoftmax_kernel,
        out_shape=jax.ShapeDtypeStruct((Rp, Vp), jnp.float32),
        grid_spec=pltpu.PrefetchScalarGridSpec(
            num_scalar_prefetch=0,
            grid=grid,
            in_specs=[pl.BlockSpec((tm, H), lambda i, p, j: (i, 0)),
                      pl.BlockSpec((H, tv), lambda i, p, j: (0, j)),
                      pl.BlockSpec((1, tv), lambda i, p, j: (0, j))],
            # Block index is (i, 0) for the whole LSE pass, (i, j) during the
            # normalize pass -> only correct data is ever written back.
            out_specs=pl.BlockSpec((tm, tv), lambda i, p, j: (i, j * p)),
            scratch_shapes=[pltpu.VMEM((tm, 1), jnp.float32),
                            pltpu.VMEM((tm, 1), jnp.float32)]),
        compiler_params=pltpu.CompilerParams(
            dimension_semantics=("parallel", "arbitrary", "arbitrary"),
            vmem_limit_bytes=_vmem_limit()),
    )(x2d, w_bf16, b_f32)
    return logp[:R, :V]


# --------------------------------------------------------------------------
# Parameter init (deterministic, PyTorch-like shapes / init ranges)
# --------------------------------------------------------------------------
def init_params(key, vocab_size, embedding_dim, hidden_size, num_layers):
    keys = jax.random.split(key, 3 + num_layers)
    emb = jax.random.normal(keys[0], (vocab_size, embedding_dim), jnp.float32)
    emb = emb.at[0].set(0.0)                       # padding_idx=0 row is zeros
    k = 1.0 / np.sqrt(hidden_size)
    gru_layers = []
    for l in range(num_layers):
        din = embedding_dim if l == 0 else hidden_size
        lk = jax.random.split(keys[1 + l], 4)
        w_ih = jax.random.uniform(lk[0], (3 * hidden_size, din), jnp.float32, -k, k)
        w_hh = jax.random.uniform(lk[1], (3 * hidden_size, hidden_size), jnp.float32, -k, k)
        b_ih = jax.random.uniform(lk[2], (3 * hidden_size,), jnp.float32, -k, k)
        b_hh = jax.random.uniform(lk[3], (3 * hidden_size,), jnp.float32, -k, k)
        gru_layers.append((w_ih, w_hh, b_ih, b_hh))
    w_fc = jax.random.uniform(keys[1 + num_layers],
                              (vocab_size, hidden_size), jnp.float32, -k, k)
    b_fc = jax.random.uniform(keys[2 + num_layers],
                              (vocab_size,), jnp.float32, -k, k)
    return emb, gru_layers, (w_fc, b_fc)


def _prep_gru_layer(w_ih, w_hh, b_ih, b_hh):
    """PyTorch-layout GRU weights -> fused (Din,3H)/(H,3H) bf16 + f32 biases.

    b_hh's r/z components are folded into the x-side bias; only the n-gate
    component of b_hh stays inside the r*(...) term."""
    H = w_hh.shape[-1]
    wi_t = w_ih.T.astype(jnp.bfloat16)            # (Din, 3H), gate order [r|z|n]
    wh_t = w_hh.T.astype(jnp.bfloat16)            # (H,   3H)
    bi = (b_ih + jnp.concatenate([b_hh[:2 * H],
                                  jnp.zeros((H,), b_hh.dtype)])
          ).reshape(1, -1).astype(jnp.float32)    # (1, 3H)
    bhn = b_hh[2 * H:].reshape(1, -1).astype(jnp.float32)  # (1, H)
    return wi_t, wh_t, bi, bhn


# --------------------------------------------------------------------------
# Forward pass (== LanguageModel.forward with lengths=None)
# --------------------------------------------------------------------------
def language_model_forward(params, x, hidden=None, *,
                           time_chunk=16, row_tile=256, vocab_tile=512):
    emb, gru_layers, (w_fc, b_fc) = params
    S, B = x.shape
    H = gru_layers[0][1].shape[-1]        # w_hh: (3H, H)
    L = len(gru_layers)
    if hidden is None:
        hidden = jnp.zeros((L, B, H), jnp.float32)

    # TODO(synk): pack_padded_sequence / pad_packed_sequence (lengths path)
    #             is not implemented; only lengths=None semantics.
    net = jnp.take(emb, x, axis=0).astype(jnp.bfloat16)   # (S, B, E)

    h_out = []
    for l, (w_ih, w_hh, b_ih, b_hh) in enumerate(gru_layers):
        wi_t, wh_t, bi, bhn = _prep_gru_layer(w_ih, w_hh, b_ih, b_hh)
        net, h_last = gru_layer_pallas(net, wi_t, bi, wh_t, bhn, hidden[l],
                                       time_chunk=time_chunk)
        h_out.append(h_last)
    hidden_out = jnp.stack(h_out, axis=0)          # (num_layers, B, H)

    logp2d = fc_logsoftmax_pallas(net.reshape(S * B, H),
                                  w_fc.T.astype(jnp.bfloat16),
                                  b_fc.reshape(1, -1).astype(jnp.float32),
                                  row_tile=row_tile, vocab_tile=vocab_tile)
    return logp2d.reshape(S, B, -1), hidden_out


# --------------------------------------------------------------------------
# Pure-JAX reference with the same bf16-weight / bf16-activation / f32-acc
# numerics (so the comparison isolates kernel bugs, not mixed-precision drift).
# --------------------------------------------------------------------------
def _gru_ref(x_seq, w_ih, w_hh, b_ih, b_hh, h0):
    H = h0.shape[-1]
    wi = w_ih.T.astype(jnp.bfloat16)
    wh = w_hh.T.astype(jnp.bfloat16)
    gx_all = jnp.dot(x_seq.astype(jnp.bfloat16), wi,
                     preferred_element_type=jnp.float32) + b_ih

    def cell(h, gx):
        gh = jnp.dot(h.astype(jnp.bfloat16), wh,
                     preferred_element_type=jnp.float32) + b_hh
        r = jax.nn.sigmoid(gx[:, :H] + gh[:, :H])
        z = jax.nn.sigmoid(gx[:, H:2 * H] + gh[:, H:2 * H])
        n = jnp.tanh(gx[:, 2 * H:] + r * gh[:, 2 * H:])
        h_new = (1.0 - z) * n + z * h
        return h_new, h_new

    h_last, ys = lax.scan(cell, h0, gx_all)
    return ys, h_last


def forward_ref(params, x):
    emb, gru_layers, (w_fc, b_fc) = params
    S, B = x.shape
    H = gru_layers[0][1].shape[-1]
    net = jnp.take(emb, x, axis=0).astype(jnp.bfloat16)
    hs = []
    for (w_ih, w_hh, b_ih, b_hh) in gru_layers:
        ys, h = _gru_ref(net, w_ih, w_hh, b_ih, b_hh,
                         jnp.zeros((B, H), jnp.float32))
        net = ys.astype(jnp.bfloat16)          # match bf16 inter-layer acts
        hs.append(h)
    logits = jnp.dot(net.astype(jnp.bfloat16), w_fc.T.astype(jnp.bfloat16),
                     preferred_element_type=jnp.float32) + b_fc
    return jax.nn.log_softmax(logits, axis=2), jnp.stack(hs, 0)


# --------------------------------------------------------------------------
if __name__ == "__main__":
    vocab_size, embedding_dim, hidden_size, num_layers = 64, 16, 32, 2
    seq_len, batch = 10, 2

    key = jax.random.PRNGKey(0)
    pkey, xkey = jax.random.split(key)
    params = init_params(pkey, vocab_size, embedding_dim, hidden_size, num_layers)
    x = jax.random.randint(xkey, (seq_len, batch), 0, vocab_size, dtype=jnp.int32)

    # time_chunk=4 with seq_len=10 -> 3 grid steps per GRU layer, exercising
    # both the hidden-state carry and the padded-tail masking.
    logp, hidden = language_model_forward(params, x, time_chunk=4)
    logp = jax.block_until_ready(logp)
    hidden = jax.block_until_ready(hidden)

    logp_ref, hidden_ref = forward_ref(params, x)
    logp_ref = jax.block_until_ready(logp_ref)

    np.testing.assert_allclose(np.asarray(logp), np.asarray(logp_ref),
                               atol=2e-3, rtol=2e-3)
    np.testing.assert_allclose(np.asarray(hidden), np.asarray(hidden_ref),
                               atol=2e-3, rtol=2e-3)
    assert logp.shape == (seq_len, batch, vocab_size)
    assert hidden.shape == (num_layers, batch, hidden_size)
    print("KERNEL_OK")
</pallas_src>

<mosaic_0001>
module attributes {stable_mosaic.version = 11 : i64} {
  func.func @_gru_layer_kernel(%arg0: i32, %arg1: i32, %arg2: memref<4x2x16xbf16, #tpu.memory_space<vmem>>, %arg3: memref<16x96xbf16, #tpu.memory_space<vmem>>, %arg4: memref<1x96xf32, #tpu.memory_space<vmem>>, %arg5: memref<32x96xbf16, #tpu.memory_space<vmem>>, %arg6: memref<1x32xf32, #tpu.memory_space<vmem>>, %arg7: memref<2x32xf32, #tpu.memory_space<vmem>>, %arg8: memref<4x2x32xbf16, #tpu.memory_space<vmem>>, %arg9: memref<2x32xf32, #tpu.memory_space<vmem>>, %arg10: memref<2x32xf32, #tpu.memory_space<vmem>>) attributes {dimension_semantics = [#tpu.dimension_semantics<parallel>, #tpu.dimension_semantics<arbitrary>], iteration_bounds = array<i64: 1, 3>, scalar_prefetch = 0 : i64, scratch_operands = 1 : i64, tpu.core_type = #tpu.core_type<tc>, window_params = [{transform_indices = @transform_0, window_bounds = array<i64: 4, 2, 16>}, {pipeline_mode = #tpu.pipeline_mode<synchronous>, transform_indices = @transform_1, window_bounds = array<i64: 16, 96>}, {pipeline_mode = #tpu.pipeline_mode<synchronous>, transform_indices = @transform_2, window_bounds = array<i64: 1, 96>}, {pipeline_mode = #tpu.pipeline_mode<synchronous>, transform_indices = @transform_3, window_bounds = array<i64: 32, 96>}, {pipeline_mode = #tpu.pipeline_mode<synchronous>, transform_indices = @transform_4, window_bounds = array<i64: 1, 32>}, {transform_indices = @transform_5, window_bounds = array<i64: 2, 32>}, {transform_indices = @transform_6, window_bounds = array<i64: 4, 2, 32>}, {transform_indices = @transform_7, window_bounds = array<i64: 2, 32>}]} {
    %c0_i32 = arith.constant 0 : i32
    %0 = arith.cmpi eq, %arg1, %c0_i32 : i32
    %1 = arith.extui %0 : i1 to i32
    %c0_i32_0 = arith.constant 0 : i32
    %2 = arith.cmpi ne, %1, %c0_i32_0 : i32
    scf.if %2 {
      %c0_45 = arith.constant 0 : index
      %c0_46 = arith.constant 0 : index
      %170 = vector.load %arg7[%c0_45, %c0_46] : memref<2x32xf32, #tpu.memory_space<vmem>>, vector<2x32xf32>
      %c0_47 = arith.constant 0 : index
      %c0_48 = arith.constant 0 : index
      %171 = vector.load %arg10[%c0_47, %c0_48] : memref<2x32xf32, #tpu.memory_space<vmem>>, vector<2x32xf32>
      tpu.vector_store %arg10[%c0_47, %c0_48], %170 {strides = array<i32>} : memref<2x32xf32, #tpu.memory_space<vmem>>, vector<2x32xf32>,
    } else {
    }
    %c0 = arith.constant 0 : index
    %c0_1 = arith.constant 0 : index
    %3 = vector.load %arg3[%c0, %c0_1] : memref<16x96xbf16, #tpu.memory_space<vmem>>, vector<16x96xbf16>
    %c0_2 = arith.constant 0 : index
    %c0_3 = arith.constant 0 : index
    %4 = vector.load %arg5[%c0_2, %c0_3] : memref<32x96xbf16, #tpu.memory_space<vmem>>, vector<32x96xbf16>
    %c0_4 = arith.constant 0 : index
    %c0_5 = arith.constant 0 : index
    %5 = vector.load %arg4[%c0_4, %c0_5] : memref<1x96xf32, #tpu.memory_space<vmem>>, vector<1x96xf32>
    %c0_6 = arith.constant 0 : index
    %c0_7 = arith.constant 0 : index
    %6 = vector.load %arg6[%c0_6, %c0_7] : memref<1x32xf32, #tpu.memory_space<vmem>>, vector<1x32xf32>
    %c0_8 = arith.constant 0 : index
    %c0_9 = arith.constant 0 : index
    %c0_10 = arith.constant 0 : index
    %7 = vector.load %arg2[%c0_8, %c0_9, %c0_10] : memref<4x2x16xbf16, #tpu.memory_space<vmem>>, vector<4x2x16xbf16>
    %8 = vector.shape_cast %7 : vector<4x2x16xbf16> to vector<8x16xbf16>
    %cst = arith.constant dense<0.000000e+00> : vector<8x96xf32>
    %9 = tpu.matmul %8, %3, %cst {dimension_numbers = #tpu.dot_dimension_numbers<[1], [0], [0], [1], [0, 0, 1, 1], [], []>} : vector<8x16xbf16>, vector<16x96xbf16>, vector<8x96xf32> -> vector<8x96xf32>
    %10 = vector.broadcast %5 : vector<1x96xf32> to vector<8x96xf32>
    %11 = arith.addf %9, %10 : vector<8x96xf32>
    %12 = vector.shape_cast %11 : vector<8x96xf32> to vector<4x2x96xf32>
    %c0_11 = arith.constant 0 : index
    %c0_12 = arith.constant 0 : index
    %13 = vector.load %arg10[%c0_11, %c0_12] : memref<2x32xf32, #tpu.memory_space<vmem>>, vector<2x32xf32>
    %14 = vector.extract_strided_slice %12 {offsets = [0, 0, 0], sizes = [1, 2, 96], strides = [1, 1, 1]} : vector<4x2x96xf32> to vector<1x2x96xf32>
    %15 = vector.shape_cast %14 : vector<1x2x96xf32> to vector<2x96xf32>
    %16 = arith.truncf %13 : vector<2x32xf32> to vector<2x32xbf16>
    %cst_13 = arith.constant dense<0.000000e+00> : vector<2x96xf32>
    %17 = tpu.matmul %16, %4, %cst_13 {dimension_numbers = #tpu.dot_dimension_numbers<[1], [0], [0], [1], [0, 0, 1, 1], [], []>} : vector<2x32xbf16>, vector<32x96xbf16>, vector<2x96xf32> -> vector<2x96xf32>
    %18 = vector.extract_strided_slice %15 {offsets = [0, 0], sizes = [2, 32], strides = [1, 1]} : vector<2x96xf32> to vector<2x32xf32>
    %19 = vector.extract_strided_slice %17 {offsets = [0, 0], sizes = [2, 32], strides = [1, 1]} : vector<2x96xf32> to vector<2x32xf32>
    %20 = arith.addf %18, %19 : vector<2x32xf32>
    %21 = arith.negf %20 : vector<2x32xf32>
    %22 = math.exp %21 : vector<2x32xf32>
    %cst_14 = arith.constant 1.000000e+00 : f32
    %23 = vector.broadcast %cst_14 : f32 to vector<2x32xf32>
    %24 = arith.addf %23, %22 : vector<2x32xf32>
    %25 = arith.divf %23, %24 : vector<2x32xf32>
    %26 = vector.extract_strided_slice %15 {offsets = [0, 32], sizes = [2, 32], strides = [1, 1]} : vector<2x96xf32> to vector<2x32xf32>
    %27 = vector.extract_strided_slice %17 {offsets = [0, 32], sizes = [2, 32], strides = [1, 1]} : vector<2x96xf32> to vector<2x32xf32>
    %28 = arith.addf %26, %27 : vector<2x32xf32>
    %29 = arith.negf %28 : vector<2x32xf32>
    %30 = math.exp %29 : vector<2x32xf32>
    %cst_15 = arith.constant 1.000000e+00 : f32
    %31 = vector.broadcast %cst_15 : f32 to vector<2x32xf32>
    %32 = arith.addf %31, %30 : vector<2x32xf32>
    %33 = arith.divf %31, %32 : vector<2x32xf32>
    %34 = vector.extract_strided_slice %15 {offsets = [0, 64], sizes = [2, 32], strides = [1, 1]} : vector<2x96xf32> to vector<2x32xf32>
    %35 = vector.extract_strided_slice %17 {offsets = [0, 64], sizes = [2, 32], strides = [1, 1]} : vector<2x96xf32> to vector<2x32xf32>
    %36 = vector.broadcast %6 : vector<1x32xf32> to vector<2x32xf32>
    %37 = arith.addf %35, %36 : vector<2x32xf32>
    %38 = arith.mulf %25, %37 : vector<2x32xf32>
    %39 = arith.addf %34, %38 : vector<2x32xf32>
    %40 = math.tanh %39 : vector<2x32xf32>
    %41 = arith.subf %13, %40 : vector<2x32xf32>
    %42 = arith.mulf %33, %41 : vector<2x32xf32>
    %43 = arith.addf %40, %42 : vector<2x32xf32>
    %44 = arith.truncf %43 : vector<2x32xf32> to vector<2x32xbf16>
    %c0_16 = arith.constant 0 : index
    %c0_17 = arith.constant 0 : index
    %c0_18 = arith.constant 0 : index
    %45 = vector.load %arg8[%c0_16, %c0_17, %c0_18] : memref<4x2x32xbf16, #tpu.memory_space<vmem>>, vector<1x2x32xbf16>
    %46 = vector.shape_cast %45 : vector<1x2x32xbf16> to vector<2x32xbf16>
    %47 = vector.shape_cast %44 : vector<2x32xbf16> to vector<1x2x32xbf16>
    tpu.vector_store %arg8[%c0_16, %c0_17, %c0_18], %47 {strides = array<i32>} : memref<4x2x32xbf16, #tpu.memory_space<vmem>>, vector<1x2x32xbf16>,
    %c4_i32 = arith.constant 4 : i32
    %48 = arith.muli %arg1, %c4_i32 : i32
    %c0_i32_19 = arith.constant 0 : i32
    %49 = arith.addi %48, %c0_i32_19 : i32
    %c10_i32 = arith.constant 10 : i32
    %50 = arith.cmpi slt, %49, %c10_i32 : i32
    %51 = arith.select %50, %43, %13 : vector<2x32xf32>
    %52 = vector.extract_strided_slice %12 {offsets = [1, 0, 0], sizes = [1, 2, 96], strides = [1, 1, 1]} : vector<4x2x96xf32> to vector<1x2x96xf32>
    %53 = vector.shape_cast %52 : vector<1x2x96xf32> to vector<2x96xf32>
    %54 = arith.truncf %51 : vector<2x32xf32> to vector<2x32xbf16>
    %cst_20 = arith.constant dense<0.000000e+00> : vector<2x96xf32>
    %55 = tpu.matmul %54, %4, %cst_20 {dimension_numbers = #tpu.dot_dimension_numbers<[1], [0], [0], [1], [0, 0, 1, 1], [], []>} : vector<2x32xbf16>, vector<32x96xbf16>, vector<2x96xf32> -> vector<2x96xf32>
    %56 = vector.extract_strided_slice %53 {offsets = [0, 0], sizes = [2, 32], strides = [1, 1]} : vector<2x96xf32> to vector<2x32xf32>
    %57 = vector.extract_strided_slice %55 {offsets = [0, 0], sizes = [2, 32], strides = [1, 1]} : vector<2x96xf32> to vector<2x32xf32>
    %58 = arith.addf %56, %57 : vector<2x32xf32>
    %59 = arith.negf %58 : vector<2x32xf32>
    %60 = math.exp %59 : vector<2x32xf32>
    %cst_21 = arith.constant 1.000000e+00 : f32
    %61 = vector.broadcast %cst_21 : f32 to vector<2x32xf32>
    %62 = arith.addf %61, %60 : vector<2x32xf32>
    %63 = arith.divf %61, %62 : vector<2x32xf32>
    %64 = vector.extract_strided_slice %53 {offsets = [0, 32], sizes = [2, 32], strides = [1, 1]} : vector<2x96xf32> to vector<2x32xf32>
    %65 = vector.extract_strided_slice %55 {offsets = [0, 32], sizes = [2, 32], strides = [1, 1]} : vector<2x96xf32> to vector<2x32xf32>
    %66 = arith.addf %64, %65 : vector<2x32xf32>
    %67 = arith.negf %66 : vector<2x32xf32>
    %68 = math.exp %67 : vector<2x32xf32>
    %cst_22 = arith.constant 1.000000e+00 : f32
    %69 = vector.broadcast %cst_22 : f32 to vector<2x32xf32>
    %70 = arith.addf %69, %68 : vector<2x32xf32>
    %71 = arith.divf %69, %70 : vector<2x32xf32>
    %72 = vector.extract_strided_slice %53 {offsets = [0, 64], sizes = [2, 32], strides = [1, 1]} : vector<2x96xf32> to vector<2x32xf32>
    %73 = vector.extract_strided_slice %55 {offsets = [0, 64], sizes = [2, 32], strides = [1, 1]} : vector<2x96xf32> to vector<2x32xf32>
    %74 = vector.broadcast %6 : vector<1x32xf32> to vector<2x32xf32>
    %75 = arith.addf %73, %74 : vector<2x32xf32>
    %76 = arith.mulf %63, %75 : vector<2x32xf32>
    %77 = arith.addf %72, %76 : vector<2x32xf32>
    %78 = math.tanh %77 : vector<2x32xf32>
    %79 = arith.subf %51, %78 : vector<2x32xf32>
    %80 = arith.mulf %71, %79 : vector<2x32xf32>
    %81 = arith.addf %78, %80 : vector<2x32xf32>
    %82 = arith.truncf %81 : vector<2x32xf32> to vector<2x32xbf16>
    %c1 = arith.constant 1 : index
    %c0_23 = arith.constant 0 : index
    %c0_24 = arith.constant 0 : index
    %83 = vector.load %arg8[%c1, %c0_23, %c0_24] : memref<4x2x32xbf16, #tpu.memory_space<vmem>>, vector<1x2x32xbf16>
    %84 = vector.shape_cast %83 : vector<1x2x32xbf16> to vector<2x32xbf16>
    %85 = vector.shape_cast %82 : vector<2x32xbf16> to vector<1x2x32xbf16>
    tpu.vector_store %arg8[%c1, %c0_23, %c0_24], %85 {strides = array<i32>} : memref<4x2x32xbf16, #tpu.memory_space<vmem>>, vector<1x2x32xbf16>,
    %c4_i32_25 = arith.constant 4 : i32
    %86 = arith.muli %arg1, %c4_i32_25 : i32
    %c1_i32 = arith.constant 1 : i32
    %87 = arith.addi %86, %c1_i32 : i32
    %c10_i32_26 = arith.constant 10 : i32
    %88 = arith.cmpi slt, %87, %c10_i32_26 : i32
    %89 = arith.select %88, %81, %51 : vector<2x32xf32>
    %90 = vector.extract_strided_slice %12 {offsets = [2, 0, 0], sizes = [1, 2, 96], strides = [1, 1, 1]} : vector<4x2x96xf32> to vector<1x2x96xf32>
    %91 = vector.shape_cast %90 : vector<1x2x96xf32> to vector<2x96xf32>
    %92 = arith.truncf %89 : vector<2x32xf32> to vector<2x32xbf16>
    %cst_27 = arith.constant dense<0.000000e+00> : vector<2x96xf32>
    %93 = tpu.matmul %92, %4, %cst_27 {dimension_numbers = #tpu.dot_dimension_numbers<[1], [0], [0], [1], [0, 0, 1, 1], [], []>} : vector<2x32xbf16>, vector<32x96xbf16>, vector<2x96xf32> -> vector<2x96xf32>
    %94 = vector.extract_strided_slice %91 {offsets = [0, 0], sizes = [2, 32], strides = [1, 1]} : vector<2x96xf32> to vector<2x32xf32>
    %95 = vector.extract_strided_slice %93 {offsets = [0, 0], sizes = [2, 32], strides = [1, 1]} : vector<2x96xf32> to vector<2x32xf32>
    %96 = arith.addf %94, %95 : vector<2x32xf32>
    %97 = arith.negf %96 : vector<2x32xf32>
    %98 = math.exp %97 : vector<2x32xf32>
    %cst_28 = arith.constant 1.000000e+00 : f32
    %99 = vector.broadcast %cst_28 : f32 to vector<2x32xf32>
    %100 = arith.addf %99, %98 : vector<2x32xf32>
    %101 = arith.divf %99, %100 : vector<2x32xf32>
    %102 = vector.extract_strided_slice %91 {offsets = [0, 32], sizes = [2, 32], strides = [1, 1]} : vector<2x96xf32> to vector<2x32xf32>
    %103 = vector.extract_strided_slice %93 {offsets = [0, 32], sizes = [2, 32], strides = [1, 1]} : vector<2x96xf32> to vector<2x32xf32>
    %104 = arith.addf %102, %103 : vector<2x32xf32>
    %105 = arith.negf %104 : vector<2x32xf32>
    %106 = math.exp %105 : vector<2x32xf32>
    %cst_29 = arith.constant 1.000000e+00 : f32
    %107 = vector.broadcast %cst_29 : f32 to vector<2x32xf32>
    %108 = arith.addf %107, %106 : vector<2x32xf32>
    %109 = arith.divf %107, %108 : vector<2x32xf32>
    %110 = vector.extract_strided_slice %91 {offsets = [0, 64], sizes = [2, 32], strides = [1, 1]} : vector<2x96xf32> to vector<2x32xf32>
    %111 = vector.extract_strided_slice %93 {offsets = [0, 64], sizes = [2, 32], strides = [1, 1]} : vector<2x96xf32> to vector<2x32xf32>
    %112 = vector.broadcast %6 : vector<1x32xf32> to vector<2x32xf32>
    %113 = arith.addf %111, %112 : vector<2x32xf32>
    %114 = arith.mulf %101, %113 : vector<2x32xf32>
    %115 = arith.addf %110, %114 : vector<2x32xf32>
    %116 = math.tanh %115 : vector<2x32xf32>
    %117 = arith.subf %89, %116 : vector<2x32xf32>
    %118 = arith.mulf %109, %117 : vector<2x32xf32>
    %119 = arith.addf %116, %118 : vector<2x32xf32>
    %120 = arith.truncf %119 : vector<2x32xf32> to vector<2x32xbf16>
    %c2 = arith.constant 2 : index
    %c0_30 = arith.constant 0 : index
    %c0_31 = arith.constant 0 : index
    %121 = vector.load %arg8[%c2, %c0_30, %c0_31] : memref<4x2x32xbf16, #tpu.memory_space<vmem>>, vector<1x2x32xbf16>
    %122 = vector.shape_cast %121 : vector<1x2x32xbf16> to vector<2x32xbf16>
    %123 = vector.shape_cast %120 : vector<2x32xbf16> to vector<1x2x32xbf16>
    tpu.vector_store %arg8[%c2, %c0_30, %c0_31], %123 {strides = array<i32>} : memref<4x2x32xbf16, #tpu.memory_space<vmem>>, vector<1x2x32xbf16>,
    %c4_i32_32 = arith.constant 4 : i32
    %124 = arith.muli %arg1, %c4_i32_32 : i32
    %c2_i32 = arith.constant 2 : i32
    %125 = arith.addi %124, %c2_i32 : i32
    %c10_i32_33 = arith.constant 10 : i32
    %126 = arith.cmpi slt, %125, %c10_i32_33 : i32
    %127 = arith.select %126, %119, %89 : vector<2x32xf32>
    %128 = vector.extract_strided_slice %12 {offsets = [3, 0, 0], sizes = [1, 2, 96], strides = [1, 1, 1]} : vector<4x2x96xf32> to vector<1x2x96xf32>
    %129 = vector.shape_cast %128 : vector<1x2x96xf32> to vector<2x96xf32>
    %130 = arith.truncf %127 : vector<2x32xf32> to vector<2x32xbf16>
    %cst_34 = arith.constant dense<0.000000e+00> : vector<2x96xf32>
    %131 = tpu.matmul %130, %4, %cst_34 {dimension_numbers = #tpu.dot_dimension_numbers<[1], [0], [0], [1], [0, 0, 1, 1], [], []>} : vector<2x32xbf16>, vector<32x96xbf16>, vector<2x96xf32> -> vector<2x96xf32>
    %132 = vector.extract_strided_slice %129 {offsets = [0, 0], sizes = [2, 32], strides = [1, 1]} : vector<2x96xf32> to vector<2x32xf32>
    %133 = vector.extract_strided_slice %131 {offsets = [0, 0], sizes = [2, 32], strides = [1, 1]} : vector<2x96xf32> to vector<2x32xf32>
    %134 = arith.addf %132, %133 : vector<2x32xf32>
    %135 = arith.negf %134 : vector<2x32xf32>
    %136 = math.exp %135 : vector<2x32xf32>
    %cst_35 = arith.constant 1.000000e+00 : f32
    %137 = vector.broadcast %cst_35 : f32 to vector<2x32xf32>
    %138 = arith.addf %137, %136 : vector<2x32xf32>
    %139 = arith.divf %137, %138 : vector<2x32xf32>
    %140 = vector.extract_strided_slice %129 {offsets = [0, 32], sizes = [2, 32], strides = [1, 1]} : vector<2x96xf32> to vector<2x32xf32>
    %141 = vector.extract_strided_slice %131 {offsets = [0, 32], sizes = [2, 32], strides = [1, 1]} : vector<2x96xf32> to vector<2x32xf32>
    %142 = arith.addf %140, %141 : vector<2x32xf32>
    %143 = arith.negf %142 : vector<2x32xf32>
    %144 = math.exp %143 : vector<2x32xf32>
    %cst_36 = arith.constant 1.000000e+00 : f32
    %145 = vector.broadcast %cst_36 : f32 to vector<2x32xf32>
    %146 = arith.addf %145, %144 : vector<2x32xf32>
    %147 = arith.divf %145, %146 : vector<2x32xf32>
    %148 = vector.extract_strided_slice %129 {offsets = [0, 64], sizes = [2, 32], strides = [1, 1]} : vector<2x96xf32> to vector<2x32xf32>
    %149 = vector.extract_strided_slice %131 {offsets = [0, 64], sizes = [2, 32], strides = [1, 1]} : vector<2x96xf32> to vector<2x32xf32>
    %150 = vector.broadcast %6 : vector<1x32xf32> to vector<2x32xf32>
    %151 = arith.addf %149, %150 : vector<2x32xf32>
    %152 = arith.mulf %139, %151 : vector<2x32xf32>
    %153 = arith.addf %148, %152 : vector<2x32xf32>
    %154 = math.tanh %153 : vector<2x32xf32>
    %155 = arith.subf %127, %154 : vector<2x32xf32>
    %156 = arith.mulf %147, %155 : vector<2x32xf32>
    %157 = arith.addf %154, %156 : vector<2x32xf32>
    %158 = arith.truncf %157 : vector<2x32xf32> to vector<2x32xbf16>
    %c3 = arith.constant 3 : index
    %c0_37 = arith.constant 0 : index
    %c0_38 = arith.constant 0 : index
    %159 = vector.load %arg8[%c3, %c0_37, %c0_38] : memref<4x2x32xbf16, #tpu.memory_space<vmem>>, vector<1x2x32xbf16>
    %160 = vector.shape_cast %159 : vector<1x2x32xbf16> to vector<2x32xbf16>
    %161 = vector.shape_cast %158 : vector<2x32xbf16> to vector<1x2x32xbf16>
    tpu.vector_store %arg8[%c3, %c0_37, %c0_38], %161 {strides = array<i32>} : memref<4x2x32xbf16, #tpu.memory_space<vmem>>, vector<1x2x32xbf16>,
    %c4_i32_39 = arith.constant 4 : i32
    %162 = arith.muli %arg1, %c4_i32_39 : i32
    %c3_i32 = arith.constant 3 : i32
    %163 = arith.addi %162, %c3_i32 : i32
    %c10_i32_40 = arith.constant 10 : i32
    %164 = arith.cmpi slt, %163, %c10_i32_40 : i32
    %165 = arith.select %164, %157, %127 : vector<2x32xf32>
    %c0_41 = arith.constant 0 : index
    %c0_42 = arith.constant 0 : index
    %166 = vector.load %arg10[%c0_41, %c0_42] : memref<2x32xf32, #tpu.memory_space<vmem>>, vector<2x32xf32>
    tpu.vector_store %arg10[%c0_41, %c0_42], %165 {strides = array<i32>} : memref<2x32xf32, #tpu.memory_space<vmem>>, vector<2x32xf32>,
    %c2_i32_43 = arith.constant 2 : i32
    %167 = arith.cmpi eq, %arg1, %c2_i32_43 : i32
    %168 = arith.extui %167 : i1 to i32
    %c0_i32_44 = arith.constant 0 : i32
    %169 = arith.cmpi ne, %168, %c0_i32_44 : i32
    scf.if %169 {
      %c0_45 = arith.constant 0 : index
      %c0_46 = arith.constant 0 : index
      %170 = vector.load %arg9[%c0_45, %c0_46] : memref<2x32xf32, #tpu.memory_space<vmem>>, vector<2x32xf32>
      tpu.vector_store %arg9[%c0_45, %c0_46], %165 {strides = array<i32>} : memref<2x32xf32, #tpu.memory_space<vmem>>, vector<2x32xf32>,
    } else {
    }
    return
  }
  func.func @transform_0(%arg0: i32, %arg1: i32) -> (i32, i32, i32) {
    %c0_i32 = arith.constant 0 : i32
    %c0_i32_0 = arith.constant 0 : i32
    return %arg1, %arg0, %c0_i32 : i32, i32, i32
  }
  func.func @transform_1(%arg0: i32, %arg1: i32) -> (i32, i32) {
    %c0_i32 = arith.constant 0 : i32
    %c0_i32_0 = arith.constant 0 : i32
    %c0_i32_1 = arith.constant 0 : i32
    return %c0_i32, %c0_i32_0 : i32, i32
  }
  func.func @transform_2(%arg0: i32, %arg1: i32) -> (i32, i32) {
    %c0_i32 = arith.constant 0 : i32
    %c0_i32_0 = arith.constant 0 : i32
    %c0_i32_1 = arith.constant 0 : i32
    return %c0_i32, %c0_i32_0 : i32, i32
  }
  func.func @transform_3(%arg0: i32, %arg1: i32) -> (i32, i32) {
    %c0_i32 = arith.constant 0 : i32
    %c0_i32_0 = arith.constant 0 : i32
    %c0_i32_1 = arith.constant 0 : i32
    return %c0_i32, %c0_i32_0 : i32, i32
  }
  func.func @transform_4(%arg0: i32, %arg1: i32) -> (i32, i32) {
    %c0_i32 = arith.constant 0 : i32
    %c0_i32_0 = arith.constant 0 : i32
    %c0_i32_1 = arith.constant 0 : i32
    return %c0_i32, %c0_i32_0 : i32, i32
  }
  func.func @transform_5(%arg0: i32, %arg1: i32) -> (i32, i32) {
    %c0_i32 = arith.constant 0 : i32
    %c0_i32_0 = arith.constant 0 : i32
    return %arg0, %c0_i32 : i32, i32
  }
  func.func @transform_6(%arg0: i32, %arg1: i32) -> (i32, i32, i32) {
    %c0_i32 = arith.constant 0 : i32
    %c0_i32_0 = arith.constant 0 : i32
    return %arg1, %arg0, %c0_i32 : i32, i32, i32
  }
  func.func @transform_7(%arg0: i32, %arg1: i32) -> (i32, i32) {
    %c0_i32 = arith.constant 0 : i32
    %c0_i32_0 = arith.constant 0 : i32
    return %arg0, %c0_i32 : i32, i32
  }
}

</mosaic_0001>

<bundles_post_ra>
// kernel: tpu_custom_call.1
= control target key start
LH: loop header
LB: loop body
LE: loop exit
PB: predicated region body
PF: predicated region fallthrough
CT: control target
= control target key end

     0   :  { %13 = vsyncpa [#allocation4], 0  ;;  %s2061_s0 = inlined_call_operand.hbm [shape: bf16[12,2,16], index: 0, kind: input, shape index: {}]   ;;  %s2062_s1 = inlined_call_operand.hbm [shape: bf16[16,96], index: 1, kind: input, shape index: {}]   ;;  %s2063_s2 = inlined_call_operand.vmem [shape: f32[1,96], index: 2, kind: input, shape index: {}]   ;;  %s2064_s3 = inlined_call_operand.hbm [shape: bf16[32,96], index: 3, kind: input, shape index: {}]   ;;  %s2065_s4 = inlined_call_operand.vmem [shape: f32[1,32], index: 4, kind: input, shape index: {}]   ;;  %s2066_s5 = inlined_call_operand.vmem [shape: f32[2,32], index: 5, kind: input, shape index: {}]   ;;  %s2067_s6 = inlined_call_operand.hbm [shape: bf16[12,2,32], index: 6, kind: output, shape index: {0}]   ;;  %s2068_s7 = inlined_call_operand.hbm [shape: f32[2,32], index: 7, kind: output, shape index: {1}]  }
   0x1   :  { %15 = vsyncpa [#allocation4 + $0x1], 0 }
   0x2   :  { %16 = vsyncpa [#allocation7], 0 }
   0x3   :  { %17 = vsyncpa [#allocation5], 0 }
   0x4   :  { %19 = vsyncpa [#allocation5 + $0x1], 0 }
   0x5   :  { %20 = vsyncpa [#allocation11], 0  ;;  %s1650_s24 = smov 0   ;;  %s1652_s25 = smov 0  }
   0x6   :  { %s1654_s26 = smov 0   ;;  %s1656_s27 = smov 0  }
   0x7   :  { %s1658_s28 = smov 0   ;;  %s1660_s29 = smov 0  }
   0x8 LB: > { %2076 = sst [smem:[#allocation16_spill]] %s1570_s24  ;;  %s1162_s30 = sadd.s32 4294967295, %s1590_s29   ;;  %s1590_s29 = sphi %s1660_s29, %s26_s29   ;;  %s1586_s28 = sphi %s1658_s28, %s2098_s28   ;;  %s1582_s27 = sphi %s1656_s27, %s2097_s27   ;;  %s1578_s26 = sphi %s1654_s26, %s2096_s26   ;;  %s1574_s25 = sphi %s1652_s25, %s2095_s25   ;;  %s1570_s24 = sphi %s1650_s24, %s2094_s24  }
   0x9   : > { %s1163_s8 = sadd.s32 4294967294, %s1590_s29   ;;  %p60_p0 = scmp.ne.s32.totalorder %s1574_s25, %s1570_s24 }
   0xa   : > { %p1684_p1 = scmp.eq.s32.totalorder %s1162_s30, 0  ;;  %p1688_p2 = scmp.eq.s32.totalorder %s1162_s30, 2 }
   0xb   : > { %p202_p3 = scmp.eq.s32.totalorder %s1163_s8, 2  ;;  %p1164_p5 = scmp.ge.s32.totalorder %s1590_s29, 1 }
   0xc   : > { %s2077_s9 = scalar_select %p1684_p1, 1, 0 }
   0xd   : > { %s2078_s10 = scalar_select %p1688_p2, 1, 0 }
   0xe   : > { %p1694_p4 = por %p1684_p1, %p60_p0  ;;  %p1699_p6 = por %p202_p3, %p60_p0 }
   0xf   : > { %p235_p7 = scmp.lt.s32.totalorder %s1590_s29, 4  ;;  %s1592_s14 = smov [#allocation6]  }
  0x10   : > { %s2079_s11 = scalar_select %p1694_p4, 1, 0 }
  0x11   : > { %s2080_s12 = scalar_select %p1699_p6, 1, 0 }
  0x12   : > { %p1704_p8 = pnand %p1164_p5, %p235_p7  ;;  %s247_s15 = sshll.u32 %s1592_s14, 4  ;;  %s248_s15 = int_to_ptr.vmem [resolvable:$true] %s247_s15 }
  0x13   : > { %2081 = sst [smem:[#allocation17_spill]] %s2080_s12  ;;  %s1593_s17 = smov [#allocation8]  }
  0x14   : > { %s2082_s13 = scalar_select %p1704_p8, 1, 0 }
  0x15   : > { %p1274_p9 = pneg %p1704_p8  ;;  %s263_s18 = sshll.u32 %s1593_s17, 4  ;;  %s1716_s18 = int_to_ptr.vmem [resolvable:$true] %s263_s18 }
  0x16   : > { %s1388_s21 = scalar_lea.hbm %s2062_s1, 128 }
  0x17   : > { %p1712_p10 = pnand %p1274_p9, %p1684_p1  ;;  %p1389_p11 = scmp.ne.s32.totalorder %s2062_s1, %s1388_s21 }
  0x18   : > { %p1395_p3 = scmp.lt.u32.totalorder %s1388_s21, %s2062_s1 }
  0x19   : > { %p1390_p12 = pneg %p1712_p10 }
  0x1b   : > { %p1391_p13 = pnand %p1390_p12, %p1389_p11 }
  0x1d   : > { %p1392_p0 = pneg %p1391_p13 }
  0x1f   : > { %p1397_p5 = pnand %p1395_p3, %p1392_p0 }
  0x21   : > { %1400 = shalt.err (!%p1397_p5)
}
  0x22   : > { %s1401_s14 = scalar_lea.vmem %s248_s15, 128  ;;  %p1409_p1 = scmp.lt.s32.totalorder %s248_s15, %s248_s15 }
  0x23   : > { %p1402_p7 = scmp.ne.s32.totalorder %s248_s15, %s1401_s14  ;;  %p1410_p4 = scmp.lt.s32.totalorder %s1401_s14, %s1401_s14 }
  0x25   : > { %p1404_p9 = pnand %p1402_p7, %p1390_p12  ;;  %p1411_p8 = por %p1410_p4, %p1409_p1 }
  0x27   : > { %p1405_p6 = pneg %p1404_p9 }
  0x29   : > { %p1412_p2 = pnand %p1411_p8, %p1405_p6 }
  0x2b   : > { %1415 = shalt.err (!%p1412_p2)
}
  0x2c   : > { %s1594_s17 = smov 64   ;;  %s1595_s19 = smov 4  }
  0x2d   : > { %1277 = dma.hbm_to_vmem [thread:$0]  (!%p1712_p10), %s2062_s1, 128, %s248_s15, [#allocation7], %s1594_s17, %s1594_s17, %s1595_s19  }
  0x2e   : > { %s1416_s30 = scalar_lea.hbm %s2064_s3, 256 }
  0x2f   : > { %p1417_p11 = scmp.ne.s32.totalorder %s2064_s3, %s1416_s30  ;;  %p1423_p4 = scmp.lt.u32.totalorder %s1416_s30, %s2064_s3 }
  0x31   : > { %p1419_p1 = pnand %p1417_p11, %p1390_p12 }
  0x33   : > { %p1420_p2 = pneg %p1419_p1 }
  0x35   : > { %p1425_p6 = pnand %p1423_p4, %p1420_p2 }
  0x37   : > { %1428 = shalt.err (!%p1425_p6)
}
  0x38   : > { %s1429_s15 = scalar_lea.vmem %s1716_s18, 256  ;;  %p1437_p3 = scmp.lt.s32.totalorder %s1716_s18, %s1716_s18 }
  0x39   : > { %p1430_p8 = scmp.ne.s32.totalorder %s1716_s18, %s1429_s15  ;;  %p1438_p5 = scmp.lt.s32.totalorder %s1429_s15, %s1429_s15 }
  0x3b   : > { %p1432_p13 = pnand %p1430_p8, %p1390_p12  ;;  %p1439_p7 = por %p1438_p5, %p1437_p3 }
  0x3d   : > { %p1433_p0 = pneg %p1432_p13 }
  0x3f   : > { %p1440_p9 = pnand %p1439_p7, %p1433_p0 }
  0x41   : > { %1443 = shalt.err (!%p1440_p9)
}
  0x42   : > { %1280 = dma.hbm_to_vmem [thread:$0]  (!%p1712_p10), %s2064_s3, 256, %s1716_s18, [#allocation7], %s1594_s17, %s1594_s17, %s1595_s19  }
  0x43   : > { %s35_s20 = sadd.s32 1, %s1586_s28  ;;  %s47_s21 = sadd.s32 1, %s1578_s26 }
  0x44   : > { %p36_p12 = scmp.ge.s32.totalorder %s35_s20, 3  ;;  %p54_p11 = scmp.ne.s32.totalorder %s1578_s26, %s1574_s25 }
  0x45   : > { %p55_p1 = scmp.eq.s32.totalorder %s1590_s29, 0  ;;  %p1291_p2 = scmp.lt.s32.totalorder %s1590_s29, 3 }
  0x46   : > { %s2100_s20 = smov (%p36_p12, %s35_s20), 0  ;;  %p2084_p6 = scmp.ne.s32.totalorder %s2078_s10, 0 }
  0x47   : > { %p56_p4 = por %p55_p1, %p54_p11  ;;  %s42_s22 = ssub.s32 %s1586_s28, %s2100_s20 }
  0x48   : > { %p1775_p8 = por %p2084_p6, %p54_p11  ;;  %s287_s23 = sand.u32 1, %s1578_s26  }
  0x49   : > { %p45_p13 = scmp.eq.s32.totalorder %s42_s22, 0  ;;  %s1169_s18 = sshll.u32 %s287_s23, 2 }
  0x4a   : > { %s1204_s17 = sshll.u32 %s1586_s28, 6  ;;  %s291_s15 = scalar_lea.vmem [#allocation3], %s1169_s18 }
  0x4b   : > { %s1784_s19 = scalar_select %p45_p13, %s1578_s26, %s47_s21  }
  0x4c   : > { %s1789_s14 = scalar_lea.hbm %s2061_s0, %s1204_s17  ;;  %s299_s24 = sshll.u32 %s291_s15, 4  ;;  %s1797_s24 = int_to_ptr.vmem [resolvable:$true] %s299_s24 }
  0x4d   : > { %p1793_p10 = pnand %p1291_p2, %p56_p4  ;;  %s1799_s21 = scalar_lea.sflag [#allocation4], %s287_s23 }
  0x4e   : > { %s1444_s22 = scalar_lea.hbm %s1789_s14, 64  ;;  %s1449_s30 = scalar_lea.hbm %s2061_s0, 192 }
  0x4f   : > { %p1445_p0 = scmp.ne.s32.totalorder %s1789_s14, %s1444_s22  ;;  %p1446_p3 = pneg %p1793_p10 }
  0x50   : > { %p1450_p9 = scmp.lt.u32.totalorder %s1789_s14, %s2061_s0  ;;  %p1451_p12 = scmp.lt.u32.totalorder %s1449_s30, %s1444_s22 }
  0x51   : > { %p1447_p5 = pnand %p1446_p3, %p1445_p0  ;;  %p1453_p1 = scmp.lt.u32.totalorder %s1444_s22, %s1789_s14 }
  0x52   : > { %p1452_p11 = por %p1451_p12, %p1450_p9 }
  0x53   : > { %p1448_p7 = pneg %p1447_p5 }
  0x54   : > { %p1454_p2 = por %p1453_p1, %p1452_p11 }
  0x56   : > { %p1455_p4 = pnand %p1454_p2, %p1448_p7 }
  0x58   : > { %1458 = shalt.err (!%p1455_p4)
}
  0x59   : > { %s1459_s23 = scalar_lea.vmem %s1797_s24, 64  ;;  %s1596_s18 = smov [#allocation3]  }
  0x5a   : > { %p1460_p6 = scmp.ne.s32.totalorder %s1797_s24, %s1459_s23  ;;  %s1464_s17 = sshll.u32 %s1596_s18, 4  ;;  %s1465_s17 = int_to_ptr.vmem [resolvable:$false] %s1464_s17 }
  0x5b   : > { %s1466_s8 = scalar_lea.vmem %s1465_s17, 128  ;;  %p1467_p5 = scmp.lt.s32.totalorder %s1797_s24, %s1465_s17 }
  0x5c   : > { %p1462_p13 = pnand %p1460_p6, %p1446_p3  ;;  %p1468_p9 = scmp.lt.s32.totalorder %s1466_s8, %s1459_s23 }
  0x5e   : > { %p1463_p0 = pneg %p1462_p13  ;;  %p1469_p12 = por %p1468_p9, %p1467_p5 }
  0x60   : > { %p1470_p11 = pnand %p1469_p12, %p1463_p0 }
  0x62   : > { %1473 = shalt.err (!%p1470_p11)
}
  0x63   : > { %s1597_s22 = smov 16   ;;  %s1598_s30 = smov 1  }
  0x64   : > { %1284 = dma.hbm_to_vmem [thread:$0]  (!%p1793_p10), %s1789_s14, 64, %s1797_s24, %s1799_s21, %s1597_s22, %s1597_s22, %s1598_s30  }
  0x65   : > { %p2087_p3 = scmp.ne.s32.totalorder %s2082_s13, 0 }
  0x66   : > { %s1830_s15 = sand.u32 (!%p2087_p3), 1, %s1574_s25   ;;  %p2088_p7 = scmp.ne.s32.totalorder (!%p2087_p3), %s2079_s11, 0 }
  0x67   : > { %311 = sbr.rel (%p2087_p3) target bundleno = 3565 (0xded), region = 44  ;;  %s1173_s23 = sshll.u32 (!%p2087_p3), %s1830_s15, 2 }
  0x68   : > { %s314_s18 = scalar_lea.sflag (!%p2087_p3), [#allocation4], %s1830_s15  ;;  %s317_s17 = scalar_lea.vmem (!%p2087_p3), [#allocation3], %s1173_s23 }
  0x6e   : > { %1553 = dma.done.wait (%p2088_p7), %s314_s18, 64  }
  0x6f   : > { %1555 = vsyncadd (%p2088_p7), %s314_s18, 4294967232  ;;  %p2089_p1 = scmp.ne.s32.totalorder %s2077_s9, 0 }
  0x71   : > { %1557 = dma.done.wait (%p2089_p1), [#allocation7], 384  }
  0x72   : > { %1559 = vsyncadd (%p2089_p1), [#allocation7], 4294966912  ;;  %s1842_s13 = scalar_lea.vmem [#allocation9], %s1173_s23  ;;  %p1177_p10 = scmp.ne.s32.totalorder %s1582_s27, 0 }
  0x73   : > { %v371_v0 = vld [vmem:[%s2066_s5] sm:$0x3] (!%p1177_p10)  ;;  %vm372_vm0 = vcmask (!%p1177_p10), 254976  }
  0x74   : > { %370 = sbr.rel (%p1177_p10) target bundleno = 123 (0x7b), region = 60  ;;  %373 = vst.msk [vmem:[#allocation2] sm:$0x3] (!%p1177_p10), %vm372_vm0, %v371_v0 }
  0x7b PF: > { %v1848_v1 = vld [vmem:[#allocation8] sm:$0xff]   ;;  %v1599_v2 = vmov 0.0   ;;  %v1851_v3 = vld [vmem:[#allocation8 + $0x8] sm:$0xff]   ;;  %v401_v4 = vlaneseq  ;;  %vm1600_vm1 = vmmov 0   ;;  %v1363_v5 = vld [vmem:[#allocation6] sm:$0xff]   ;;  %vm506_vm2 = vcmask 261120  }
  0x7c   : > { %1226 = vmatprep.subr.bf16.mxu1 %v1599_v2  ;;  %1220 = vmatprep.subr.bf16.mxu0 %v1599_v2  ;;  %v1858_v6 = vld [vmem:[#allocation2] sm:$0x3]  ;;  %v382_v7 = vld [vmem:[%s317_s17] sm:$0x1]  ;;  %v383_v8 = vld [vmem:[%s317_s17 + $0x1] sm:$0x1] }
  0x7d   : > { %1227 = vmatpush3.bf16.msra.mxu1 %v1848_v1  ;;  %1230 = vmatprep.mubr.msk.bf16.mxu1 %vm1600_vm1, %v1599_v2  ;;  %v384_v9 = vld [vmem:[%s317_s17 + $0x2] sm:$0x1]  ;;  %v385_v10 = vld [vmem:[%s317_s17 + $0x3] sm:$0x1]  ;;  %v493_v11 = vpack.c.bf16 %v1858_v6, %v1858_v6  ;;  %v1601_v12 = vmov 1966171168   ;;  %v396_v16 = vcombine.low %v382_v7, %v383_v8 }
  0x7e   : > { %1228 = vmatprep.subr.bf16.mxu1 %v1599_v2  ;;  %1222 = vmatprep.mubr.msk.bf16.mxu0 %vm1600_vm1, %v1599_v2  ;;  %v399_v13 = vunpack.c.l.s4 %v1601_v12  ;;  %v402_v14 = vshrl.u32 %v401_v4, 7  ;;  %v1185_v15 = vld [vmem:[%s2065_s4] ss:$0 sm:$0xff]  ;;  %s1602_s12 = smov 64   ;;  %v397_v17 = vcombine.low %v384_v9, %v385_v10  ;;  %vm426_vm3 = vcmask 130048   ;;  %s1604_s22 = smov 32  }
  0x7f   : > { %1221 = vmatpush3.bf16.msra.mxu0 %v1363_v5  ;;  %562 = vrot.lane.b32.xlu0 %v1185_v15, %s1602_s12  ;;  %v1603_v24 = vmov 1983009808   ;;  %v1178_v39 = vld [vmem:[%s2063_s2] ss:$0 sm:$0xff]  ;;  %s1913_s30 = sshll.u32 %s1582_s27, 2  ;;  %s1605_s18 = smov 96  }
  0x80   : > { %1234 = vmatprep.subr.bf16.mxu0 %v1599_v2  ;;  %v400_v18 = vunpack.c.0.s8 %v399_v13  ;;  %v473_v25 = vunpack.c.l.s4 %v1603_v24  ;;  %p635_p2 = scmp.lt.s32.totalorder %s1913_s30, 10  ;;  %s756_s17 = sadd.s32 1, %s1913_s30  ;;  %vm632_vm7 = vcmask 253952   ;;  %vm995_vm9 = vcmask 254976  }
  0x81   : > { %1229 = vmatpush3.bf16.msra.mxu1 %v1851_v3  ;;  %p757_p4 = scmp.lt.s32.totalorder %s756_s17, 10  ;;  %s867_s24 = sadd.s32 2, %s1913_s30 }
  0x82   : > { %1242 = vmatprep.subr.bf16.mxu1 %v1599_v2  ;;  %v1872_v19 = vsub.s32 %v400_v18, %v402_v14  ;;  %v474_v26 = vunpack.c.0.s8 %v473_v25  ;;  %s636_s23 = scalar_select %p635_p2, 1, 0 }
  0x83   : > { %s758_s14 = scalar_select %p757_p4, 1, 0 }
  0x84   : > { %1231 = vmatmul.mubr.msk.bf16.vlgmr.msra.gmra.mrb[0].mxu1 %vm506_vm2, %v493_v11  ;;  %v404_v20 = vrot.slane %v396_v16, %v1872_v19  ;;  %v411_v21 = vrot.slane %v397_v17, %v1872_v19  ;;  %v1890_v28 = vsub.s32 %v474_v26, %v402_v14  ;;  %v637_v59 = vstv %s636_s23  ;;  %p868_p6 = scmp.lt.s32.totalorder %s867_s24, 10  ;;  %s978_s11 = sadd.s32 3, %s1913_s30 }
  0x85   : > { %1243 = vmatpush3.bf16.msra.mxu1 %v1848_v1  ;;  %1246 = vmatprep.mubr.msk.bf16.mxu1 %vm1600_vm1, %v1599_v2  ;;  %vm638_vm4 = vcmp.eq.s32.totalorder %v637_v59, 1  ;;  %p979_p13 = scmp.lt.s32.totalorder %s978_s11, 10  ;;  %p1196_p0 = scmp.ne.s32.totalorder %s1582_s27, 2 }
  0x86   : > { %1244 = vmatprep.subr.bf16.mxu1 %v1599_v2  ;;  %v412_v22 = vcombine.low %v404_v20, %v411_v21  ;;  %v646_v56 = vrot.slane %v1858_v6, %v1890_v28  ;;  %s869_s9 = scalar_select %p868_p6, 1, 0 }
  0x87   : > { %s980_s21 = scalar_select %p979_p13, 1, 0 }
  0x88   : > { %v419_v23 = vrot.slane %v412_v22, %v1872_v19 }
  0x89   : > { %1245 = vmatpush3.bf16.msra.mxu1 %v1851_v3 }
  0x8a   : > { %1223 = vmatmul.mubr.msk.bf16.vlgmr.msra.gmra.mrb[0].mxu0 %vm426_vm3, %v419_v23  ;;  %v759_v23 = vstv %s758_s14 }
  0x8b   : > { %1235 = vmatpush3.bf16.msra.mxu0 %v1848_v1  ;;  %1238 = vmatprep.mubr.msk.bf16.mxu0 %vm1600_vm1, %v1599_v2  ;;  %vm760_vm5 = vcmp.eq.s32.totalorder %v759_v23, 1 }
  0x8c   : > { %1236 = vmatprep.subr.bf16.mxu0 %v1599_v2 }
  0x8f   : > { %1237 = vmatpush3.bf16.msra.mxu0 %v1851_v3 }
  0x90   : > { %1250 = vmatprep.subr.bf16.mxu0 %v1599_v2 }
  0xf1   : > { %v1888_v27 = vpop.permute.xlu0 %562 }
 0x157   : > { %v544_v29 = vpop.f32.mrb[0].mxu1 }
 0x158   : > { %v565_v30 = vadd.f32 %v1888_v27, %v544_v29  ;;  %v1232_v31 = vpop.f32.mrb[1].mxu1 }
 0x159   : > { %v547_v32 = vpop.f32.mrb[2].mxu1 }
 0x15a   : > { %v573_v33 = vrot.slane %v565_v30, %v1890_v28  ;;  %v1233_v34 = vpop.f32.mrb[3].mxu1 }
 0x15c   : > { %574 = vrot.lane.b32.xlu0 %v573_v33, %s1602_s12 }
 0x15d   : > { %v464_v35 = vpop.f32.mrb[0].mxu0 }
 0x15e   : > { %v1224_v36 = vpop.f32.mrb[1].mxu0  ;;  %v1898_v40 = vadd.f32 %v1178_v39, %v464_v35 }
 0x15f   : > { %v467_v37 = vpop.f32.mrb[2].mxu0 }
 0x160   : > { %v1225_v38 = vpop.f32.mrb[3].mxu0  ;;  %v478_v41 = vrot.slane %v1898_v40, %v1890_v28  ;;  %v471_v37 = vcombine.high %v1898_v40, %v1898_v40 }
 0x162   : > { %v550_v42 = vadd.f32 %v544_v29, %v478_v41  ;;  %v486_v11 = vcombine.high %v478_v41, %v478_v41  ;;  %v485_v38 = vrot.slane %v471_v37, %v1890_v28 }
 0x164   : > { %v1184_v43 = vmul.f32 -1.442695, %v550_v42 }
 0x166   : > { %1364 = vpow2.f32 %v1184_v43 }
 0x170   : > { %v1365_v44 = vpop.eup %1364 }
 0x171   : > { %v554_v45 = vadd.f32 1.0, %v1365_v44 }
 0x173   : > { %1366 = vrcp.f32 %v554_v45 }
 0x17d   : > { %v1367_v46 = vpop.eup %1366 }
 0x1ce   : > { %v575_v47 = vpop.permute.xlu0 %574 }
 0x1cf   : > { %v577_v48 = vmul.f32 %v1367_v46, %v575_v47 }
 0x1d1   : > { %579 = vrot.lane.b32.xlu1 %v577_v48, %s1602_s12 }
 0x243   : > { %v580_v49 = vpop.permute.xlu1 %579 }
 0x244   : > { %v582_v50 = vadd.f32 %v580_v49, %v478_v41 }
 0x246   : > { %1368 = vtanh.f32 %v582_v50 }
 0x250   : > { %v1369_v51 = vpop.eup %1368 }
 0x251   : > { %v591_v52 = vrot.slane %v1369_v51, %v1890_v28 }
 0x253   : > { %592 = vrot.lane.b32.xlu1 %v591_v52, %s1602_s12  ;;  %v870_v52 = vstv %s869_s9 }
 0x254   : > { %vm871_vm6 = vcmp.eq.s32.totalorder %v870_v52, 1 }
 0x2c5   : > { %v593_v53 = vpop.permute.xlu1 %592 }
 0x2c6   : > { %v595_v54 = vsub.f32 %v1858_v6, %v593_v53 }
 0x2c8   : > { %v603_v55 = vrot.slane %v595_v54, %v1890_v28 }
 0x2ca   : > { %604 = vrot.lane.b32.xlu0 %v603_v55, %s1604_s22 }
 0x2ce   : > { %647 = vrot.lane.b32.xlu0 %v646_v56, %s1602_s12 }
 0x33c   : > { %v605_v57 = vpop.permute.xlu0 %604 }
 0x33d   : > { %v607_v58 = vmul.f32 %v1367_v46, %v605_v57 }
 0x33f   : > { %609 = vrot.lane.b32.xlu1 %v607_v58, %s1604_s22 }
 0x340   : > { %v648_v61 = vpop.permute.xlu0 %647 }
 0x3b1   : > { %v610_v60 = vpop.permute.xlu1 %609 }
 0x3b2   : > { %v1916_v62 = vadd.f32 %v1369_v51, %v610_v60 }
 0x3b4   : > { %v650_v63 = vsel %vm638_vm4, %v1916_v62, %v648_v61 }
 0x3b5   : > { %v651_v0 = vpack.c.bf16 %v650_v63, %v650_v63 }
 0x3b7   : > { %653 = vrot.lane.b32.xlu1 %v651_v0, %s1602_s12 }
 0x429   : > { %v654_v4 = vpop.permute.xlu1 %653 }
 0x42a   : > { %1239 = vmatmul.mubr.msk.bf16.vlgmr.msra.gmra.mrb[4].mxu0 %vm506_vm2, %v654_v4  ;;  %v487_v4 = vcombine.high %v485_v38, %v485_v38 }
 0x42b   : > { %1251 = vmatpush3.bf16.msra.mxu0 %v1848_v1  ;;  %1254 = vmatprep.mubr.msk.bf16.mxu0 %vm1600_vm1, %v1599_v2 }
 0x42c   : > { %1252 = vmatprep.subr.bf16.mxu0 %v1599_v2 }
 0x42f   : > { %1253 = vmatpush3.bf16.msra.mxu0 %v1851_v3 }
 0x4fd   : > { %v692_v5 = vpop.f32.mrb[4].mxu0 }
 0x4fe   : > { %v705_v6 = vadd.f32 %v692_v5, %v1888_v27  ;;  %v1240_v7 = vpop.f32.mrb[5].mxu0  ;;  %v698_v12 = vadd.f32 %v692_v5, %v486_v11 }
 0x4ff   : > { %v695_v8 = vpop.f32.mrb[6].mxu0 }
 0x500   : > { %v713_v9 = vrot.slane %v705_v6, %v1890_v28  ;;  %v1241_v10 = vpop.f32.mrb[7].mxu0  ;;  %v1188_v1 = vmul.f32 -1.442695, %v698_v12 }
 0x502   : > { %714 = vrot.lane.b32.xlu0 %v713_v9, %s1602_s12  ;;  %1370 = vpow2.f32 %v1188_v1  ;;  %v613_v1 = vpack.c.bf16 %v1916_v62, %v1916_v62 }
 0x50c   : > { %v1371_v13 = vpop.eup %1370 }
 0x50d   : > { %v702_v14 = vadd.f32 1.0, %v1371_v13 }
 0x50f   : > { %1372 = vrcp.f32 %v702_v14  ;;  %v621_v14 = vrot.slane %v613_v1, %v1872_v19 }
 0x519   : > { %v1373_v2 = vpop.eup %1372 }
 0x574   : > { %v715_v3 = vpop.permute.xlu0 %714 }
 0x575   : > { %v717_v15 = vmul.f32 %v1373_v2, %v715_v3 }
 0x577   : > { %719 = vrot.lane.b32.xlu1 %v717_v15, %s1602_s12 }
 0x5e9   : > { %v720_v16 = vpop.permute.xlu1 %719 }
 0x5ea   : > { %v722_v17 = vadd.f32 %v720_v16, %v486_v11  ;;  %v628_v16 = vrot.slane %v621_v14, %v1872_v19 }
 0x5ec   : > { %1374 = vtanh.f32 %v722_v17 }
 0x5f6   : > { %v1375_v18 = vpop.eup %1374 }
 0x5f7   : > { %v724_v20 = vsub.f32 %v650_v63, %v1375_v18 }
 0x5f9   : > { %726 = vrot.lane.b32.xlu0 %v724_v20, %s1605_s18 }
 0x66b   : > { %v727_v21 = vpop.permute.xlu0 %726 }
 0x66c   : > { %v729_v22 = vmul.f32 %v1373_v2, %v727_v21 }
 0x66e   : > { %731 = vrot.lane.b32.xlu1 %v729_v22, %s1604_s22 }
 0x6e0   : > { %v732_v24 = vpop.permute.xlu1 %731 }
 0x6e1   : > { %v1933_v25 = vadd.f32 %v1375_v18, %v732_v24 }
 0x6e3   : > { %v761_v26 = vsel %vm760_vm5, %v1933_v25, %v650_v63  ;;  %v735_v62 = vpack.c.bf16 %v1933_v25, %v1933_v25  ;;  %v981_v25 = vstv %s980_s21 }
 0x6e4   : > { %v762_v29 = vpack.c.bf16 %v761_v26, %v761_v26  ;;  %vm982_vm8 = vcmp.eq.s32.totalorder %v981_v25, 1 }
 0x6e5   : > { %v743_v20 = vrot.slane %v735_v62, %v1872_v19 }
 0x6e6   : > { %764 = vrot.lane.b32.xlu0 %v762_v29, %s1602_s12 }
 0x6e7   : > { %v750_v23 = vrot.slane %v743_v20, %v1872_v19 }
 0x758   : > { %v765_v30 = vpop.permute.xlu0 %764 }
 0x759   : > { %1247 = vmatmul.mubr.msk.bf16.vlgmr.msra.gmra.mrb[4].mxu1 %vm506_vm2, %v765_v30 }
 0x82c   : > { %v803_v31 = vpop.f32.mrb[4].mxu1 }
 0x82d   : > { %v816_v32 = vadd.f32 %v803_v31, %v1888_v27  ;;  %v1248_v33 = vpop.f32.mrb[5].mxu1  ;;  %v809_v39 = vadd.f32 %v803_v31, %v485_v38 }
 0x82e   : > { %v806_v34 = vpop.f32.mrb[6].mxu1 }
 0x82f   : > { %v824_v35 = vrot.slane %v816_v32, %v1890_v28  ;;  %v1249_v36 = vpop.f32.mrb[7].mxu1  ;;  %v1191_v41 = vmul.f32 -1.442695, %v809_v39 }
 0x831   : > { %825 = vrot.lane.b32.xlu1 %v824_v35, %s1602_s12  ;;  %1376 = vpow2.f32 %v1191_v41 }
 0x83b   : > { %v1377_v42 = vpop.eup %1376 }
 0x83c   : > { %v813_v43 = vadd.f32 1.0, %v1377_v42 }
 0x83e   : > { %1378 = vrcp.f32 %v813_v43 }
 0x848   : > { %v1379_v44 = vpop.eup %1378 }
 0x8a3   : > { %v826_v45 = vpop.permute.xlu1 %825 }
 0x8a4   : > { %v828_v46 = vmul.f32 %v1379_v44, %v826_v45 }
 0x8a6   : > { %830 = vrot.lane.b32.xlu0 %v828_v46, %s1602_s12 }
 0x918   : > { %v831_v47 = vpop.permute.xlu0 %830 }
 0x919   : > { %v833_v48 = vadd.f32 %v831_v47, %v485_v38 }
 0x91b   : > { %1380 = vtanh.f32 %v833_v48 }
 0x925   : > { %v1381_v49 = vpop.eup %1380 }
 0x926   : > { %v835_v50 = vsub.f32 %v761_v26, %v1381_v49 }
 0x928   : > { %837 = vrot.lane.b32.xlu1 %v835_v50, %s1605_s18 }
 0x99a   : > { %v838_v40 = vpop.permute.xlu1 %837 }
 0x99b   : > { %v840_v51 = vmul.f32 %v1379_v44, %v838_v40 }
 0x99d   : > { %842 = vrot.lane.b32.xlu0 %v840_v51, %s1604_s22 }
 0xa0f   : > { %v843_v53 = vpop.permute.xlu0 %842 }
 0xa10   : > { %v845_v54 = vadd.f32 %v1381_v49, %v843_v53 }
 0xa12   : > { %v872_v55 = vsel %vm871_vm6, %v845_v54, %v761_v26  ;;  %v846_v2 = vpack.c.bf16 %v845_v54, %v845_v54 }
 0xa13   : > { %v873_v56 = vpack.c.bf16 %v872_v55, %v872_v55 }
 0xa14   : > { %v854_v15 = vrot.slane %v846_v2, %v1872_v19 }
 0xa15   : > { %875 = vrot.lane.b32.xlu1 %v873_v56, %s1602_s12 }
 0xa16   : > { %v861_v17 = vrot.slane %v854_v15, %v1872_v19 }
 0xa87   : > { %v876_v57 = vpop.permute.xlu1 %875 }
 0xa88   : > { %1255 = vmatmul.mubr.msk.bf16.vlgmr.msra.gmra.mrb[8].mxu0 %vm506_vm2, %v876_v57 }
 0xb5b   : > { %v914_v58 = vpop.f32.mrb[8].mxu0 }
 0xb5c   : > { %v927_v59 = vadd.f32 %v914_v58, %v1888_v27  ;;  %v1256_v60 = vpop.f32.mrb[9].mxu0  ;;  %v920_v5 = vadd.f32 %v914_v58, %v487_v4 }
 0xb5d   : > { %v917_v61 = vpop.f32.mrb[10].mxu0 }
 0xb5e   : > { %v935_v63 = vrot.slane %v927_v59, %v1890_v28  ;;  %v1257_v0 = vpop.f32.mrb[11].mxu0  ;;  %v1194_v6 = vmul.f32 -1.442695, %v920_v5 }
 0xb60   : > { %936 = vrot.lane.b32.xlu0 %v935_v63, %s1602_s12  ;;  %1382 = vpow2.f32 %v1194_v6 }
 0xb6a   : > { %v1383_v7 = vpop.eup %1382 }
 0xb6b   : > { %v924_v8 = vadd.f32 1.0, %v1383_v7 }
 0xb6d   : > { %1384 = vrcp.f32 %v924_v8 }
 0xb77   : > { %v1385_v9 = vpop.eup %1384 }
 0xbd2   : > { %v937_v10 = vpop.permute.xlu0 %936 }
 0xbd3   : > { %v939_v11 = vmul.f32 %v1385_v9, %v937_v10 }
 0xbd5   : > { %941 = vrot.lane.b32.xlu1 %v939_v11, %s1602_s12 }
 0xc47   : > { %v942_v27 = vpop.permute.xlu1 %941 }
 0xc48   : > { %v944_v12 = vadd.f32 %v942_v27, %v487_v4 }
 0xc4a   : > { %1386 = vtanh.f32 %v944_v12 }
 0xc54   : > { %v1387_v13 = vpop.eup %1386 }
 0xc55   : > { %v946_v3 = vsub.f32 %v872_v55, %v1387_v13 }
 0xc57   : > { %948 = vrot.lane.b32.xlu0 %v946_v3, %s1605_s18 }
 0xc5b   : > { %629 = vrot.lane.b32.xlu0 %v628_v16, %s1602_s12 }
 0xc5f   : > { %862 = vrot.lane.b32.xlu0 %v861_v17, %s1602_s12 }
 0xcc9   : > { %v949_v18 = vpop.permute.xlu0 %948 }
 0xcca   : > { %v951_v21 = vmul.f32 %v1385_v9, %v949_v18 }
 0xccc   : > { %953 = vrot.lane.b32.xlu1 %v951_v21, %s1604_s22 }
 0xccd   : > { %v630_v22 = vpop.permute.xlu0 %629 }
 0xcce   : > { %633 = vst.msk [vmem:[%s1842_s13] sm:$0x1] %vm632_vm7, %v630_v22 }
 0xcd0   : > { %751 = vrot.lane.b32.xlu1 %v750_v23, %s1602_s12 }
 0xcd1   : > { %v863_v24 = vpop.permute.xlu0 %862 }
 0xcd2   : > { %1192 = vst.msk [vmem:[%s1842_s13 + $0x2] sm:$0x1] %vm632_vm7, %v863_v24 }
 0xd3e   : > { %v954_v26 = vpop.permute.xlu1 %953 }
 0xd3f   : > { %v956_v29 = vadd.f32 %v1387_v13, %v954_v26 }
 0xd41   : > { %v957_v30 = vpack.c.bf16 %v956_v29, %v956_v29  ;;  %v983_v31 = vsel %vm982_vm8, %v956_v29, %v872_v55 }
 0xd42   : > { %v752_v32 = vpop.permute.xlu1 %751  ;;  %v991_v33 = vrot.slane %v983_v31, %v1890_v28 }
 0xd43   : > { %v965_v34 = vrot.slane %v957_v30, %v1872_v19  ;;  %1189 = vst.msk [vmem:[%s1842_s13 + $0x1] sm:$0x1] %vm632_vm7, %v752_v32 }
 0xd44   : > { %992 = vrot.lane.b32.xlu0 %v991_v33, %s1602_s12 }
 0xd45   : > { %v972_v35 = vrot.slane %v965_v34, %v1872_v19 }
 0xd47   : > { %973 = vrot.lane.b32.xlu1 %v972_v35, %s1602_s12 }
 0xdb4   : > { %1000 = sbr.rel (%p1196_p0) target bundleno = 3515 (0xdbb), region = 64 }
 0xdb6   : > { %v993_v36 = vpop.permute.xlu0 %992 }
 0xdb7   : > { %996 = vst.msk [vmem:[#allocation2] sm:$0x3] %vm995_vm9, %v993_v36  ;;  %1001 = vst.msk [vmem:[#allocation10] sm:$0x3] (!%p1196_p0), %vm995_vm9, %v993_v36 }
 0xdb9   : > { %v974_v37 = vpop.permute.xlu1 %973 }
 0xdba   : > { %1195 = vst.msk [vmem:[%s1842_s13 + $0x3] sm:$0x1] %vm632_vm7, %v974_v37 }
 0xdbb PF: > { %s1205_s8 = sshll.u32 %s1582_s27, 6  ;;  %s1017_s23 = sshll.u32 %s1842_s13, 4  ;;  %s1991_s23 = int_to_ptr.vmem [resolvable:$true] %s1017_s23 }
 0xdbc   : > { %s1988_s12 = scalar_lea.hbm %s2067_s6, %s1205_s8  ;;  %s1003_s18 = scalar_lea.sflag [#allocation5], %s1830_s15 }
 0xdbd   : > { %s1474_s17 = scalar_lea.vmem %s1991_s23, 64  ;;  %s1606_s14 = smov [#allocation9]  }
 0xdbe   : > { %p1475_p5 = scmp.ne.s32.totalorder %s1991_s23, %s1474_s17  ;;  %s1478_s24 = sshll.u32 %s1606_s14, 4  ;;  %s1479_s24 = int_to_ptr.vmem [resolvable:$false] %s1478_s24 }
 0xdbf   : > { %s1480_s27 = scalar_lea.vmem %s1479_s24, 128  ;;  %p1481_p11 = scmp.lt.s32.totalorder %s1991_s23, %s1479_s24 }
 0xdc0   : > { %p1476_p9 = pnand %p1475_p5, %p1775_p8  ;;  %p1482_p3 = scmp.lt.s32.totalorder %s1480_s27, %s1474_s17 }
 0xdc2   : > { %p1477_p12 = pneg %p1476_p9  ;;  %p1483_p7 = por %p1482_p3, %p1481_p11 }
 0xdc4   : > { %p1484_p1 = pnand %p1483_p7, %p1477_p12 }
 0xdc6   : > { %1487 = shalt.err (!%p1484_p1)
}
 0xdc7   : > { %s1488_s13 = scalar_lea.hbm %s1988_s12, 64  ;;  %s1492_s21 = scalar_lea.hbm %s2067_s6, 192 }
 0xdc8   : > { %p1489_p10 = scmp.ne.s32.totalorder %s1988_s12, %s1488_s13  ;;  %p1493_p6 = scmp.lt.u32.totalorder %s1988_s12, %s2067_s6 }
 0xdc9   : > { %p1494_p13 = scmp.lt.u32.totalorder %s1492_s21, %s1488_s13  ;;  %p1496_p5 = scmp.lt.u32.totalorder %s1488_s13, %s1988_s12 }
 0xdca   : > { %p1490_p2 = pnand %p1489_p10, %p1775_p8 }
 0xdcb   : > { %p1495_p0 = por %p1494_p13, %p1493_p6 }
 0xdcc   : > { %p1491_p4 = pneg %p1490_p2 }
 0xdcd   : > { %p1497_p9 = por %p1496_p5, %p1495_p0 }
 0xdcf   : > { %p1498_p12 = pnand %p1497_p9, %p1491_p4 }
 0xdd1   : > { %1501 = shalt.err (!%p1498_p12)
}
 0xdd2   : > { %s1607_s30 = smov 16   ;;  %s1608_s17 = smov 1  }
 0xdd3   : > { %1268 = dma.vmem_to_hbm [thread:$0]  (%p1775_p8), %s1991_s23, 64, %s1988_s12, %s1003_s18, %s1607_s30, %s1607_s30, %s1608_s17  }
 0xdd4   : > { %s1609_s14 = smov [#allocation10]   ;;  %p2090_p3 = scmp.ne.s32.totalorder %s2078_s10, 0 }
 0xdd5   : > { %s1033_s24 = sshll.u32 %s1609_s14, 4  ;;  %s1034_s24 = int_to_ptr.vmem [resolvable:$true] %s1033_s24 }
 0xdd6   : > { %s1502_s27 = scalar_lea.vmem %s1034_s24, 32  ;;  %p1509_p10 = scmp.lt.s32.totalorder %s1034_s24, %s1034_s24 }
 0xdd7   : > { %p1503_p11 = scmp.ne.s32.totalorder %s1034_s24, %s1502_s27  ;;  %p1510_p2 = scmp.lt.s32.totalorder %s1502_s27, %s1502_s27 }
 0xdd9   : > { %p1504_p7 = pnand %p1503_p11, %p2090_p3  ;;  %p1511_p4 = por %p1510_p2, %p1509_p10 }
 0xddb   : > { %p1505_p1 = pneg %p1504_p7 }
 0xddd   : > { %p1512_p6 = pnand %p1511_p4, %p1505_p1 }
 0xddf   : > { %1515 = shalt.err (!%p1512_p6)
}
 0xde0   : > { %s1516_s16 = scalar_lea.hbm %s2068_s7, 32 }
 0xde1   : > { %p1517_p8 = scmp.ne.s32.totalorder %s2068_s7, %s1516_s16  ;;  %p1522_p5 = scmp.lt.u32.totalorder %s1516_s16, %s2068_s7 }
 0xde3   : > { %p1518_p13 = pnand %p1517_p8, %p2090_p3 }
 0xde5   : > { %p1519_p0 = pneg %p1518_p13 }
 0xde7   : > { %p1524_p9 = pnand %p1522_p5, %p1519_p0 }
 0xde9   : > { %1527 = shalt.err (!%p1524_p9)
}
 0xdea   : > { %1270 = dma.vmem_to_hbm [thread:$0]  (%p2090_p3), %s1034_s24, 32, %s2068_s7, [#allocation11]  }
 0xdeb   : > { %1561 = dma.done.wait (%p2090_p3), [#allocation11], 32  }
 0xdec   : > { %1563 = vsyncadd (%p2090_p3), [#allocation11], 4294967264 }
 0xded PF: > { %s2091_s8 = sld [smem:[#allocation16_spill]]  ;;  %s2092_s22 = sld [smem:[#allocation17_spill]] }
 0xdee   : > { %p1296_p12 = scmp.ge.s32.totalorder %s1590_s29, 2 }
 0xdf3   : > { %s1049_s30 = sand.u32 1, %s2091_s8   ;;  %p2093_p11 = scmp.ne.s32.totalorder %s2092_s22, 0 }
 0xdf4   : > { %s1050_s17 = scalar_lea.sflag [#allocation5], %s1049_s30 }
 0xdf5   : > { %p1286_p7 = pnand %p1296_p12, %p2093_p11 }
 0xdf7   : > { %1565 = dma.done.wait (!%p1286_p7), %s1050_s17, 64  }
 0xdf8   : > { %1567 = vsyncadd (!%p1286_p7), %s1050_s17, 4294967232  ;;  %s26_s29 = sadd.s32 1, %s1590_s29   ;;  %s2094_s24 = smov %s1574_s25 }
 0xdf9   : > { %p23_p1 = scmp.ge.s32.totalorder %s26_s29, 5   ;;  %s2095_s25 = smov %s1578_s26 }
 0xdfa   : > { %s2096_s26 = smov %s1784_s19  ;;  %s2097_s27 = smov %s1586_s28 }
 0xdfb   : > { %s2098_s28 = smov %s2100_s20  ;;  %25 = sbr.rel (!%p23_p1) target bundleno = 8 (0x8), region = 120 }
 0xe02   :  { %1055 = vsyncpa [#allocation4], 1 }
 0xe03   :  { %1057 = vsyncpa [#allocation4 + $0x1], 1 }
 0xe04   :  { %1058 = vsyncpa [#allocation7], 1 }
 0xe05   :  { %1059 = vsyncpa [#allocation5], 1 }
 0xe06   :  { %1061 = vsyncpa [#allocation5 + $0x1], 1 }
 0xe07   :  { %1062 = vsyncpa [#allocation11], 1 }

</bundles_post_ra>
